<compile_context>
chip_gen: v7x
topology: tpu7x:2x2x1
jax: 0.10.0
libtpu: 0.0.40
codegen_flags: <defaults>
</compile_context>

<pallas_src>
import functools

import jax
import jax.numpy as jnp
from jax.experimental import pallas as pl
from jax.experimental.pallas import tpu as pltpu

C_IN = 320            # input channels of the 1x1 conv
TP_MAX = 4096         # max spatial tile width (lanes); multiple of 128.
                      # (Safe under v5e's 16 MiB scoped-VMEM default; raise to
                      # 8192 on v7x only together with vmem_limit_bytes.)
NB_MAX = 8            # max batch images fused per grid step (small-HW case)
X_TILE_BYTES = 5 << 20  # per-buffer budget for the x tile (Pallas double-buffers)


def _round_up(x, m):
    return pl.cdiv(x, m) * m


def _depthnet_kernel(x_ref, w_ref, b_ref, o_ref, *, nb):
    # x_ref: (nb, C_IN, tp) VMEM   w_ref: (1, C_IN) VMEM
    # b_ref: (1,)           SMEM   o_ref: (nb, 1, tp) VMEM
    w = w_ref[...]
    b = b_ref[0]
    for i in range(nb):  # static unroll; nb <= 8
        # 1x1 conv over channels == (1, C) @ (C, tp) matmul on the MXU.
        y = jnp.dot(w, x_ref[i], preferred_element_type=jnp.float32) + b
        # PyTorch Softplus(beta=1, threshold=20).
        sp = jnp.log1p(jnp.exp(jnp.minimum(y, 20.0)))
        o_ref[i] = jnp.where(y > 20.0, y, sp).astype(o_ref.dtype)


def depthnet_forward(x_nchw, weight, bias):
    """DepthNet forward.

    x_nchw: (N, 320, H, W) float32 or bfloat16.
    weight: (1, 320, 1, 1).  bias: (1,).
    Returns (N, 1, H, W) in x's dtype.
    """
    n, c, h, w = x_nchw.shape
    assert c == C_IN
    hw = h * w

    # NCHW -> (N, C, H*W): contiguous reshape, no HBM data movement.
    x_flat = x_nchw.reshape(n, c, hw)
    w_row = weight.reshape(1, C_IN).astype(x_nchw.dtype)   # lane-dense (1, C)
    b_vec = bias.reshape(1).astype(jnp.float32)            # scalar, SMEM path

    x_bytes = jnp.dtype(x_nchw.dtype).itemsize

    # Spatial tile: lane-multiple, as large as useful (no host-side padding;
    # the partial last block is bounds-masked by Pallas).
    tp = min(TP_MAX, _round_up(hw, 128))
    # Fuse several images per grid step when the spatial tile is small, keeping
    # one x buffer under ~5 MiB (double-buffered by the pipeline).
    nb = max(1, min(NB_MAX, n, X_TILE_BYTES // (C_IN * tp * x_bytes)))

    # v7x megacore: avoid a single-step grid so both TensorCores get work.
    if pl.cdiv(n, nb) * pl.cdiv(hw, tp) == 1:
        if n > 1:
            nb = (n + 1) // 2
        elif hw > 256:
            tp = _round_up(pl.cdiv(hw, 2), 128)

    grid = (pl.cdiv(n, nb), pl.cdiv(hw, tp))

    cost = pl.CostEstimate(
        flops=2 * n * C_IN * hw,
        transcendentals=2 * n * hw,
        bytes_accessed=n * C_IN * hw * x_bytes + n * hw * x_bytes + C_IN * 4 + 4,
    )

    out = pl.pallas_call(
        functools.partial(_depthnet_kernel, nb=nb),
        out_shape=jax.ShapeDtypeStruct((n, 1, hw), x_nchw.dtype),
        grid_spec=pltpu.PrefetchScalarGridSpec(
            num_scalar_prefetch=0,
            grid=grid,
            in_specs=[
                # x tile: nb images x all channels x tp pixels.
                pl.BlockSpec((nb, C_IN, tp), lambda b, i: (b, 0, i)),
                # weight: constant index_map -> DMA'd once.
                pl.BlockSpec((1, C_IN), lambda b, i: (0, 0)),
                # bias: whole (1,) array in SMEM (scalar read path).
                pl.BlockSpec(memory_space=pltpu.MemorySpace.SMEM),
            ],
            # output: nb lane-dense (1, tp) rows; already NCHW-flattened layout.
            out_specs=pl.BlockSpec((nb, 1, tp), lambda b, i: (b, 0, i)),
        ),
        compiler_params=pltpu.CompilerParams(
            dimension_semantics=("parallel", "parallel")),
        cost_estimate=cost,
    )(x_flat, w_row, b_vec)

    return out.reshape(n, 1, h, w)


def _reference(x_nchw, weight, bias):
    # Plain-JAX reference of Conv2d(320,1,1) + Softplus for sanity checking.
    w_mat = weight.reshape(1, C_IN)              # (1, C)
    y = jnp.einsum("nchw,oc->nohw", x_nchw.astype(jnp.float32), w_mat) \
        + bias.reshape(1, 1, 1, 1)
    return jnp.where(y > 20.0, y, jnp.log1p(jnp.exp(jnp.minimum(y, 20.0))))


if __name__ == "__main__":
    key = jax.random.PRNGKey(0)
    kx, kw, kb = jax.random.split(key, 3)

    # Small shapes consistent with the module: N=2, C=320 (fixed by the conv),
    # H=W=16.
    x = jax.random.normal(kx, (2, C_IN, 16, 16), dtype=jnp.float32)

    # Deterministic parameter init mimicking PyTorch Conv2d default
    # (uniform(-1/sqrt(fan_in), 1/sqrt(fan_in)) with fan_in = 320*1*1).
    bound = 1.0 / jnp.sqrt(jnp.float32(C_IN))
    weight = jax.random.uniform(kw, (1, C_IN, 1, 1), jnp.float32, -bound, bound)
    bias = jax.random.uniform(kb, (1,), jnp.float32, -bound, bound)

    out = depthnet_forward(x, weight, bias)
    out = jax.block_until_ready(out)

    ref = _reference(x, weight, bias)
    assert out.shape == (2, 1, 16, 16)
    assert jnp.allclose(out, ref, atol=1e-5, rtol=1e-5)

    print("KERNEL_OK")
</pallas_src>

<mosaic_0001>
module attributes {stable_mosaic.version = 11 : i64} {
  func.func @_depthnet_kernel(%arg0: i32, %arg1: i32, %arg2: memref<1x320x256xf32, #tpu.memory_space<vmem>>, %arg3: memref<1x320xf32, #tpu.memory_space<vmem>>, %arg4: memref<1xf32, #tpu.memory_space<smem>>, %arg5: memref<1x1x256xf32, #tpu.memory_space<vmem>>) attributes {dimension_semantics = [#tpu.dimension_semantics<parallel>, #tpu.dimension_semantics<parallel>], iteration_bounds = array<i64: 2, 1>, scalar_prefetch = 0 : i64, scratch_operands = 0 : i64, tpu.core_type = #tpu.core_type<tc>, window_params = [{transform_indices = @transform_0, window_bounds = array<i64: 1, 320, 256>}, {pipeline_mode = #tpu.pipeline_mode<synchronous>, transform_indices = @transform_1, window_bounds = array<i64: 1, 320>}, {transform_indices = @transform_2, window_bounds = array<i64: 1>}, {transform_indices = @transform_3, window_bounds = array<i64: 1, 1, 256>}]} {
    %c0 = arith.constant 0 : index
    %c0_0 = arith.constant 0 : index
    %0 = vector.load %arg3[%c0, %c0_0] : memref<1x320xf32, #tpu.memory_space<vmem>>, vector<1x320xf32>
    %c0_1 = arith.constant 0 : index
    %1 = memref.load %arg4[%c0_1] : memref<1xf32, #tpu.memory_space<smem>>
    %c0_2 = arith.constant 0 : index
    %c0_3 = arith.constant 0 : index
    %c0_4 = arith.constant 0 : index
    %2 = vector.load %arg2[%c0_2, %c0_3, %c0_4] : memref<1x320x256xf32, #tpu.memory_space<vmem>>, vector<1x320x256xf32>
    %3 = vector.shape_cast %2 : vector<1x320x256xf32> to vector<320x256xf32>
    %cst = arith.constant dense<0.000000e+00> : vector<1x256xf32>
    %4 = tpu.matmul %0, %3, %cst {dimension_numbers = #tpu.dot_dimension_numbers<[1], [0], [0], [1], [0, 0, 1, 1], [], []>} : vector<1x320xf32>, vector<320x256xf32>, vector<1x256xf32> -> vector<1x256xf32>
    %5 = vector.broadcast %1 : f32 to vector<1x256xf32>
    %6 = arith.addf %4, %5 : vector<1x256xf32>
    %cst_5 = arith.constant 2.000000e+01 : f32
    %7 = vector.broadcast %cst_5 : f32 to vector<1x256xf32>
    %8 = arith.minimumf %6, %7 : vector<1x256xf32>
    %9 = math.exp %8 : vector<1x256xf32>
    %10 = math.log1p %9 : vector<1x256xf32>
    %cst_6 = arith.constant 2.000000e+01 : f32
    %11 = vector.broadcast %cst_6 : f32 to vector<1x256xf32>
    %12 = arith.cmpf ogt, %6, %11 : vector<1x256xf32>
    %13 = arith.select %12, %6, %10 : vector<1x256xi1>, vector<1x256xf32>
    %c0_7 = arith.constant 0 : index
    %c0_8 = arith.constant 0 : index
    %c0_9 = arith.constant 0 : index
    %14 = vector.load %arg5[%c0_7, %c0_8, %c0_9] : memref<1x1x256xf32, #tpu.memory_space<vmem>>, vector<1x1x256xf32>
    %15 = vector.shape_cast %14 : vector<1x1x256xf32> to vector<1x256xf32>
    %16 = vector.shape_cast %13 : vector<1x256xf32> to vector<1x1x256xf32>
    tpu.vector_store %arg5[%c0_7, %c0_8, %c0_9], %16 {strides = array<i32>} : memref<1x1x256xf32, #tpu.memory_space<vmem>>, vector<1x1x256xf32>,
    return
  }
  func.func @transform_0(%arg0: i32, %arg1: i32) -> (i32, i32, i32) {
    %c0_i32 = arith.constant 0 : i32
    %c0_i32_0 = arith.constant 0 : i32
    return %arg0, %c0_i32, %arg1 : i32, i32, i32
  }
  func.func @transform_1(%arg0: i32, %arg1: i32) -> (i32, i32) {
    %c0_i32 = arith.constant 0 : i32
    %c0_i32_0 = arith.constant 0 : i32
    %c0_i32_1 = arith.constant 0 : i32
    return %c0_i32, %c0_i32_0 : i32, i32
  }
  func.func @transform_2(%arg0: i32, %arg1: i32) -> i32 {
    %c0_i32 = arith.constant 0 : i32
    %c0_i32_0 = arith.constant 0 : i32
    return %c0_i32 : i32
  }
  func.func @transform_3(%arg0: i32, %arg1: i32) -> (i32, i32, i32) {
    %c0_i32 = arith.constant 0 : i32
    %c0_i32_0 = arith.constant 0 : i32
    return %arg0, %c0_i32, %arg1 : i32, i32, i32
  }
}

</mosaic_0001>

<bundles_post_ra>
// kernel: tpu_custom_call.1
= control target key start
LH: loop header
LB: loop body
LE: loop exit
PB: predicated region body
PF: predicated region fallthrough
CT: control target
= control target key end

     0   :  { %s1195_s0 = inlined_call_operand.hbm [shape: f32[2,320,256], index: 0, kind: input, shape index: {}]   ;;  %s1196_s1 = inlined_call_operand.vmem [shape: f32[1,320], index: 1, kind: input, shape index: {}]   ;;  %s1197_s2 = inlined_call_operand.<no memory space> [shape: f32[1], index: 2, kind: input, shape index: {}]   ;;  %s1198_s3 = inlined_call_operand.hbm [shape: f32[2,1,256], index: 3, kind: output, shape index: {}]  }
   0x1   :  { %8 = sst [smem:[#allocation2]] %s1197_s2 }
   0x2   :  { %9 = vsyncpa [#allocation4], 0 }
   0x3   :  { %11 = vsyncpa [#allocation4 + $0x1], 0 }
   0x4   :  { %12 = vsyncpa [#allocation5], 0 }
   0x5   :  { %14 = vsyncpa [#allocation5 + $0x1], 0  ;;  %s923_s14 = smov 0   ;;  %s925_s15 = smov 0  }
   0x6   :  { %s927_s16 = smov 0   ;;  %s929_s17 = smov 0  }
   0x7   :  { %s931_s18 = smov 0   ;;  %s933_s19 = smov 0  }
   0x8 LB: > { %s605_s2 = sadd.s32 4294967295, %s892_s19   ;;  %s606_s20 = sadd.s32 4294967294, %s892_s19   ;;  %s892_s19 = sphi %s933_s19, %s20_s19   ;;  %s888_s18 = sphi %s931_s18, %s1213_s18   ;;  %s884_s17 = sphi %s929_s17, %s1212_s17   ;;  %s880_s16 = sphi %s927_s16, %s1211_s16   ;;  %s876_s15 = sphi %s925_s15, %s1210_s15   ;;  %s872_s14 = sphi %s923_s14, %s1209_s14  }
   0x9   : > { %s32_s21 = sadd.s32 1, %s888_s18  ;;  %s41_s22 = sadd.s32 1, %s880_s16 }
   0xa   : > { %p34_p0 = scmp.ge.s32.totalorder %s32_s21, 2  ;;  %p48_p1 = scmp.ne.s32.totalorder %s880_s16, %s876_s15 }
   0xb   : > { %p49_p2 = scmp.eq.s32.totalorder %s892_s19, 0  ;;  %p54_p3 = scmp.ne.s32.totalorder %s876_s15, %s872_s14 }
   0xc   : > { %s1215_s21 = smov (%p34_p0, %s32_s21), 0  ;;  %p55_p5 = scmp.eq.s32.totalorder %s605_s2, 0 }
   0xd   : > { %p964_p4 = por %p49_p2, %p48_p1  ;;  %s36_s24 = ssub.s32 %s888_s18, %s1215_s21 }
   0xe   : > { %p122_p6 = scmp.eq.s32.totalorder %s605_s2, 1  ;;  %p39_p7 = scmp.eq.s32.totalorder %s36_s24, 0 }
   0xf   : > { %p970_p8 = por %p55_p5, %p54_p3  ;;  %p128_p10 = scmp.eq.s32.totalorder %s606_s20, 1 }
  0x10   : > { %p974_p9 = por %p122_p6, %p48_p1  ;;  %p718_p13 = scmp.lt.s32.totalorder %s892_s19, 2 }
  0x11   : > { %s979_s27 = scalar_select %p39_p7, %s880_s16, %s41_s22  }
  0x12   : > { %s1202_s26 = scalar_select %p974_p9, 1, 0 }
  0x13   : > { %p981_p11 = por %p128_p10, %p54_p3  ;;  %s154_s29 = sand.u32 1, %s880_s16  }
  0x14   : > { %s703_s30 = smul.u32 640, %s154_s29  ;;  %p991_p0 = pnand %p718_p13, %p964_p4 }
  0x15   : > { %s1203_s28 = scalar_select %p981_p11, 1, 0 }
  0x16   : > { %s704_s4 = smul.u32 10240, %s888_s18  ;;  %s158_s9 = scalar_lea.vmem [#allocation3], %s703_s30 }
  0x17   : > { %s167_s10 = sshll.u32 %s158_s9, 4  ;;  %s1003_s11 = scalar_lea.sflag [#allocation4], %s154_s29  ;;  %s1000_s10 = int_to_ptr.vmem [resolvable:$true] %s167_s10 }
  0x18   : > { %s998_s8 = scalar_lea.hbm %s1195_s0, %s704_s4  ;;  %p782_p3 = pneg %p991_p0 }
  0x19   : > { %s780_s12 = scalar_lea.hbm %s998_s8, 10240  ;;  %s785_s20 = scalar_lea.hbm %s1195_s0, 20480 }
  0x1a   : > { %p781_p2 = scmp.ne.s32.totalorder %s998_s8, %s780_s12  ;;  %p786_p6 = scmp.lt.u32.totalorder %s998_s8, %s1195_s0 }
  0x1b   : > { %p787_p7 = scmp.lt.u32.totalorder %s785_s20, %s780_s12  ;;  %p789_p13 = scmp.lt.u32.totalorder %s780_s12, %s998_s8 }
  0x1c   : > { %p783_p4 = pnand %p782_p3, %p781_p2 }
  0x1d   : > { %p788_p10 = por %p787_p7, %p786_p6 }
  0x1e   : > { %p784_p5 = pneg %p783_p4 }
  0x1f   : > { %p790_p12 = por %p789_p13, %p788_p10 }
  0x21   : > { %p791_p1 = pnand %p790_p12, %p784_p5 }
  0x23   : > { %794 = shalt.err (!%p791_p1)
}
  0x24   : > { %s795_s24 = scalar_lea.vmem %s1000_s10, 10240  ;;  %s894_s29 = smov [#allocation3]  }
  0x25   : > { %p796_p2 = scmp.ne.s32.totalorder %s1000_s10, %s795_s24  ;;  %s800_s30 = sshll.u32 %s894_s29, 4  ;;  %s801_s30 = int_to_ptr.vmem [resolvable:$false] %s800_s30 }
  0x26   : > { %s802_s4 = scalar_lea.vmem %s801_s30, 20480  ;;  %p803_p9 = scmp.lt.s32.totalorder %s1000_s10, %s801_s30 }
  0x27   : > { %p798_p4 = pnand %p796_p2, %p782_p3  ;;  %p804_p6 = scmp.lt.s32.totalorder %s802_s4, %s795_s24 }
  0x29   : > { %p799_p11 = pneg %p798_p4  ;;  %p805_p7 = por %p804_p6, %p803_p9 }
  0x2b   : > { %p806_p10 = pnand %p805_p7, %p799_p11 }
  0x2d   : > { %809 = shalt.err (!%p806_p10)
}
  0x2e   : > { %s895_s6 = smov 256   ;;  %s896_s7 = smov 16  }
  0x2f   : > { %713 = dma.hbm_to_vmem [thread:$0]  (!%p991_p0), %s998_s8, 10240, %s1000_s10, %s1003_s11, %s895_s6, %s895_s6, %s896_s7  }
  0x30   : > { %p175_p12 = scmp.lt.s32.totalorder %s892_s19, 3  ;;  %p1205_p1 = scmp.ge.s32.totalorder %s892_s19, 1 }
  0x32   : > { %p176_p3 = pnand %p1205_p1, %p175_p12 }
  0x33   : > { %s1035_s9 = sand.u32 (!%p176_p3), 1, %s876_s15  }
  0x34   : > { %179 = sbr.rel (%p176_p3) target bundleno = 396 (0x18c), region = 32  ;;  %s182_s13 = scalar_lea.sflag (!%p176_p3), [#allocation4], %s1035_s9 }
  0x35   : > { %s705_s12 = smul.u32 (!%p176_p3), 640, %s1035_s9 }
  0x37   : > { %s1039_s2 = scalar_lea.vmem (!%p176_p3), [#allocation3], %s705_s12 }
  0x3b   : > { %863 = dma.done.wait (%p970_p8), %s182_s13, 10240  }
  0x3c   : > { %865 = vsyncadd (%p970_p8), %s182_s13, 4294957056  ;;  %v897_v0 = vmov 0.0   ;;  %v213_v1 = vld [vmem:[%s1039_s2 + $0x8] sm:$0xff]  ;;  %v215_v2 = vld [vmem:[%s1039_s2 + $0x18] sm:$0xff]  ;;  %v294_v32 = vlaneseq  ;;  %vm308_vm0 = vcmask 523264   ;;  %s211_s8 = sld [smem:[#allocation2]] }
  0x3d   : > { %446 = vmatprep.mubr.f32.mxu0 %v897_v0  ;;  %v212_v3 = vld [vmem:[%s1039_s2] sm:$0xff]  ;;  %v619_v4 = vpack.c.bf16 %v215_v2, %v213_v1  ;;  %v214_v5 = vld [vmem:[%s1039_s2 + $0x10] sm:$0xff]  ;;  %v217_v6 = vld [vmem:[%s1039_s2 + $0x28] sm:$0xff]  ;;  %s611_s10 = sshll.u32 %s1035_s9, 1  ;;  %s618_s11 = sshll.u32 %s884_s17, 5 }
  0x3e   : > { %v219_v7 = vld [vmem:[%s1039_s2 + $0x38] sm:$0xff]  ;;  %v621_v8 = vpack.c.bf16 %v214_v5, %v212_v3  ;;  %v216_v10 = vld [vmem:[%s1039_s2 + $0x20] sm:$0xff]  ;;  %v218_v11 = vld [vmem:[%s1039_s2 + $0x30] sm:$0xff]  ;;  %v1076_v45 = vshrl.u32 %v294_v32, 7  ;;  %s207_s20 = scalar_lea.vmem [#allocation6], %s611_s10  ;;  %vm501_vm5 = vcmp.lt.s32.totalorder %v294_v32, 256  ;;  %s1146_s29 = scalar_lea.hbm %s1198_s3, %s618_s11 }
  0x3f   : > { %v623_v9 = vpack.c.bf16 %v219_v7, %v217_v6  ;;  %v221_v12 = vld [vmem:[%s1039_s2 + $0x48] sm:$0xff]  ;;  %620 = vmatprep.subr.bf16.mxu1 %v619_v4  ;;  %v223_v13 = vld [vmem:[%s1039_s2 + $0x58] sm:$0xff]  ;;  %v625_v14 = vpack.c.bf16 %v218_v11, %v216_v10  ;;  %v220_v16 = vld [vmem:[%s1039_s2 + $0x40] sm:$0xff]  ;;  %s521_s22 = sshll.u32 %s207_s20, 4  ;;  %s505_s30 = scalar_lea.sflag [#allocation5], %s1035_s9  ;;  %s1148_s22 = int_to_ptr.vmem [resolvable:$true] %s521_s22 }
  0x40   : > { %622 = vmatpush1.bf16.msra.mxu1 %v621_v8  ;;  %v627_v15 = vpack.c.bf16 %v223_v13, %v221_v12  ;;  %v222_v17 = vld [vmem:[%s1039_s2 + $0x50] sm:$0xff]  ;;  %v225_v18 = vld [vmem:[%s1039_s2 + $0x68] sm:$0xff]  ;;  %v227_v19 = vld [vmem:[%s1039_s2 + $0x78] sm:$0xff]  ;;  %v300_v62 = vsub.s32 1, %v1076_v45  ;;  %s810_s4 = scalar_lea.vmem %s1148_s22, 32  ;;  %p1206_p9 = scmp.ne.s32.totalorder %s1202_s26, 0 }
  0x41   : > { %624 = vmatprep.subr.bf16.mxu1 %v623_v9  ;;  %v629_v20 = vpack.c.bf16 %v222_v17, %v220_v16  ;;  %v631_v21 = vpack.c.bf16 %v227_v19, %v225_v18  ;;  %v224_v22 = vld [vmem:[%s1039_s2 + $0x60] sm:$0xff]  ;;  %v226_v23 = vld [vmem:[%s1039_s2 + $0x70] sm:$0xff]  ;;  %v229_v24 = vld [vmem:[%s1039_s2 + $0x88] sm:$0xff]  ;;  %p811_p8 = scmp.ne.s32.totalorder %s1148_s22, %s810_s4  ;;  %s899_s17 = smov [#allocation6]  }
  0x42   : > { %v231_v25 = vld [vmem:[%s1039_s2 + $0x98] sm:$0xff]  ;;  %v633_v26 = vpack.c.bf16 %v226_v23, %v224_v22  ;;  %v228_v28 = vld [vmem:[%s1039_s2 + $0x80] sm:$0xff]  ;;  %v230_v29 = vld [vmem:[%s1039_s2 + $0x90] sm:$0xff]  ;;  %s814_s6 = sshll.u32 %s899_s17, 4  ;;  %s815_s6 = int_to_ptr.vmem [resolvable:$false] %s814_s6 }
  0x43   : > { %v635_v27 = vpack.c.bf16 %v231_v25, %v229_v24  ;;  %v233_v30 = vld [vmem:[%s1039_s2 + $0xa8] sm:$0xff]  ;;  %v235_v31 = vld [vmem:[%s1039_s2 + $0xb8] sm:$0xff]  ;;  %v637_v33 = vpack.c.bf16 %v230_v29, %v228_v28  ;;  %v232_v34 = vld [vmem:[%s1039_s2 + $0xa0] sm:$0xff]  ;;  %p812_p11 = pnand %p811_p8, %p1206_p9  ;;  %s816_s7 = scalar_lea.vmem %s815_s6, 64 }
  0x44   : > { %626 = vmatpush1.bf16.msra.mxu1 %v625_v14  ;;  %v234_v35 = vld [vmem:[%s1039_s2 + $0xb0] sm:$0xff]  ;;  %v639_v36 = vpack.c.bf16 %v235_v31, %v233_v30  ;;  %v237_v37 = vld [vmem:[%s1039_s2 + $0xc8] sm:$0xff]  ;;  %v279_v39 = vld [vmem:[%s1039_s2 + $0x218] sm:$0xff]  ;;  %p817_p5 = scmp.lt.s32.totalorder %s1148_s22, %s815_s6  ;;  %p818_p13 = scmp.lt.s32.totalorder %s816_s7, %s810_s4 }
  0x45   : > { %628 = vmatprep.subr.bf16.mxu1 %v627_v15  ;;  %v277_v38 = vld [vmem:[%s1039_s2 + $0x208] sm:$0xff]  ;;  %v239_v40 = vld [vmem:[%s1039_s2 + $0xd8] sm:$0xff]  ;;  %v276_v42 = vld [vmem:[%s1039_s2 + $0x200] sm:$0xff]  ;;  %v641_v46 = vpack.c.bf16 %v234_v35, %v232_v34  ;;  %v304_v15 = vsub.s32 2, %v1076_v45  ;;  %p813_p0 = pneg %p812_p11 }
  0x46   : > { %v683_v41 = vpack.c.bf16 %v279_v39, %v277_v38  ;;  %v278_v43 = vld [vmem:[%s1039_s2 + $0x210] sm:$0xff]  ;;  %v281_v47 = vld [vmem:[%s1039_s2 + $0x228] sm:$0xff]  ;;  %v283_v48 = vld [vmem:[%s1039_s2 + $0x238] sm:$0xff]  ;;  %v643_v50 = vpack.c.bf16 %v239_v40, %v237_v37  ;;  %p819_p2 = por %p818_p13, %p817_p5 }
  0x47   : > { %v685_v44 = vpack.c.bf16 %v278_v43, %v276_v42  ;;  %v280_v49 = vld [vmem:[%s1039_s2 + $0x220] sm:$0xff]  ;;  %v238_v52 = vld [vmem:[%s1039_s2 + $0xd0] sm:$0xff]  ;;  %v687_v53 = vpack.c.bf16 %v283_v48, %v281_v47  ;;  %v241_v55 = vld [vmem:[%s1039_s2 + $0xe8] sm:$0xff] }
  0x48   : > { %630 = vmatpush1.bf16.msra.mxu1 %v629_v20  ;;  %684 = vmatprep.subr.bf16.mxu0 %v683_v41  ;;  %v236_v51 = vld [vmem:[%s1039_s2 + $0xc0] sm:$0xff]  ;;  %v282_v54 = vld [vmem:[%s1039_s2 + $0x230] sm:$0xff]  ;;  %v243_v56 = vld [vmem:[%s1039_s2 + $0xf8] sm:$0xff]  ;;  %p820_p4 = pnand %p819_p2, %p813_p0 }
  0x49   : > { %632 = vmatprep.subr.bf16.mxu1 %v631_v21  ;;  %686 = vmatpush1.bf16.msra.mxu0 %v685_v44  ;;  %v689_v57 = vpack.c.bf16 %v282_v54, %v280_v49  ;;  %v285_v58 = vld [vmem:[%s1039_s2 + $0x248] sm:$0xff]  ;;  %v287_v59 = vld [vmem:[%s1039_s2 + $0x258] sm:$0xff]  ;;  %v284_v60 = vld [vmem:[%s1039_s2 + $0x240] sm:$0xff]  ;;  %v645_v63 = vpack.c.bf16 %v238_v52, %v236_v51  ;;  %v647_v4 = vpack.c.bf16 %v243_v56, %v241_v55 }
  0x4a   : > { %688 = vmatprep.subr.bf16.mxu0 %v687_v53  ;;  %v286_v61 = vld [vmem:[%s1039_s2 + $0x250] sm:$0xff]  ;;  %v240_v0 = vld [vmem:[%s1039_s2 + $0xe0] sm:$0xff]  ;;  %v245_v2 = vld [vmem:[%s1039_s2 + $0x108] sm:$0xff]  ;;  %v691_v3 = vpack.c.bf16 %v287_v59, %v285_v58 }
  0x4b   : > { %v242_v1 = vld [vmem:[%s1039_s2 + $0xf0] sm:$0xff]  ;;  %v247_v5 = vld [vmem:[%s1039_s2 + $0x118] sm:$0xff]  ;;  %v693_v6 = vpack.c.bf16 %v286_v61, %v284_v60  ;;  %v289_v7 = vld [vmem:[%s1039_s2 + $0x268] sm:$0xff] }
  0x4c   : > { %634 = vmatpush1.bf16.msra.mxu1 %v633_v26  ;;  %v291_v8 = vld [vmem:[%s1039_s2 + $0x278] sm:$0xff]  ;;  %v288_v10 = vld [vmem:[%s1039_s2 + $0x260] sm:$0xff]  ;;  %v290_v11 = vld [vmem:[%s1039_s2 + $0x270] sm:$0xff]  ;;  %v649_v14 = vpack.c.bf16 %v242_v1, %v240_v0  ;;  %v651_v16 = vpack.c.bf16 %v247_v5, %v245_v2  ;;  %v296_v1 = vsub.s32 0, %v1076_v45 }
  0x4d   : > { %636 = vmatprep.subr.bf16.mxu1 %v635_v27  ;;  %690 = vmatpush1.bf16.msra.mxu0 %v689_v57  ;;  %v695_v9 = vpack.c.bf16 %v291_v8, %v289_v7  ;;  %v1102_v12 = vld [vmem:[%s1196_s1] sm:$0x7]  ;;  %v246_v18 = vld [vmem:[%s1039_s2 + $0x110] sm:$0xff]  ;;  %v697_v19 = vpack.c.bf16 %v290_v11, %v288_v10  ;;  %v249_v20 = vld [vmem:[%s1039_s2 + $0x128] sm:$0xff] }
  0x4e   : > { %692 = vmatprep.subr.bf16.mxu0 %v691_v3  ;;  %v301_v13 = vrot.slane %v1102_v12, %v300_v62  ;;  %v244_v17 = vld [vmem:[%s1039_s2 + $0x100] sm:$0xff]  ;;  %v251_v21 = vld [vmem:[%s1039_s2 + $0x138] sm:$0xff]  ;;  %v305_v23 = vrot.slane %v1102_v12, %v304_v15  ;;  %v250_v26 = vld [vmem:[%s1039_s2 + $0x130] sm:$0xff]  ;;  %v297_v3 = vrot.slane %v1102_v12, %v296_v1 }
  0x4f   : > { %v653_v22 = vpack.c.bf16 %v246_v18, %v244_v17  ;;  %v655_v24 = vpack.c.bf16 %v251_v21, %v249_v20  ;;  %v248_v25 = vld [vmem:[%s1039_s2 + $0x120] sm:$0xff]  ;;  %v253_v27 = vld [vmem:[%s1039_s2 + $0x148] sm:$0xff]  ;;  %v255_v28 = vld [vmem:[%s1039_s2 + $0x158] sm:$0xff] }
  0x50   : > { %638 = vmatpush1.bf16.msra.mxu1 %v637_v33  ;;  %375 = vmatprep.mubr.f32.mxu1 %v301_v13  ;;  %v657_v29 = vpack.c.bf16 %v250_v26, %v248_v25  ;;  %v659_v30 = vpack.c.bf16 %v255_v28, %v253_v27  ;;  %v252_v31 = vld [vmem:[%s1039_s2 + $0x140] sm:$0xff]  ;;  %v254_v33 = vld [vmem:[%s1039_s2 + $0x150] sm:$0xff]  ;;  %v257_v34 = vld [vmem:[%s1039_s2 + $0x168] sm:$0xff] }
  0x51   : > { %640 = vmatprep.subr.bf16.mxu1 %v639_v36  ;;  %694 = vmatpush1.bf16.msra.mxu0 %v693_v6  ;;  %v259_v35 = vld [vmem:[%s1039_s2 + $0x178] sm:$0xff]  ;;  %v661_v36 = vpack.c.bf16 %v254_v33, %v252_v31  ;;  %v256_v38 = vld [vmem:[%s1039_s2 + $0x160] sm:$0xff]  ;;  %v258_v39 = vld [vmem:[%s1039_s2 + $0x170] sm:$0xff]  ;;  %v292_v6 = vstv %s211_s8 }
  0x52   : > { %696 = vmatprep.subr.bf16.mxu0 %v695_v9  ;;  %v663_v37 = vpack.c.bf16 %v259_v35, %v257_v34  ;;  %v261_v40 = vld [vmem:[%s1039_s2 + $0x188] sm:$0xff]  ;;  %v263_v41 = vld [vmem:[%s1039_s2 + $0x198] sm:$0xff]  ;;  %v665_v42 = vpack.c.bf16 %v258_v39, %v256_v38  ;;  %v260_v44 = vld [vmem:[%s1039_s2 + $0x180] sm:$0xff] }
  0x53   : > { %v667_v43 = vpack.c.bf16 %v263_v41, %v261_v40  ;;  %v265_v47 = vld [vmem:[%s1039_s2 + $0x1a8] sm:$0xff]  ;;  %v267_v48 = vld [vmem:[%s1039_s2 + $0x1b8] sm:$0xff]  ;;  %v264_v51 = vld [vmem:[%s1039_s2 + $0x1a0] sm:$0xff] }
  0x54   : > { %642 = vmatpush1.bf16.msra.mxu1 %v641_v46  ;;  %v262_v46 = vld [vmem:[%s1039_s2 + $0x190] sm:$0xff]  ;;  %v269_v53 = vld [vmem:[%s1039_s2 + $0x1c8] sm:$0xff]  ;;  %v271_v54 = vld [vmem:[%s1039_s2 + $0x1d8] sm:$0xff] }
  0x55   : > { %644 = vmatprep.subr.bf16.mxu1 %v643_v50  ;;  %698 = vmatpush1.bf16.msra.mxu0 %v697_v19  ;;  %v669_v49 = vpack.c.bf16 %v262_v46, %v260_v44  ;;  %v671_v50 = vpack.c.bf16 %v267_v48, %v265_v47  ;;  %v266_v52 = vld [vmem:[%s1039_s2 + $0x1b0] sm:$0xff]  ;;  %v675_v56 = vpack.c.bf16 %v271_v54, %v269_v53  ;;  %v268_v57 = vld [vmem:[%s1039_s2 + $0x1c0] sm:$0xff]  ;;  %v273_v59 = vld [vmem:[%s1039_s2 + $0x1e8] sm:$0xff] }
  0x56   : > { %v673_v55 = vpack.c.bf16 %v266_v52, %v264_v51  ;;  %v270_v58 = vld [vmem:[%s1039_s2 + $0x1d0] sm:$0xff]  ;;  %v275_v60 = vld [vmem:[%s1039_s2 + $0x1f8] sm:$0xff] }
  0x57   : > { %v677_v61 = vpack.c.bf16 %v270_v58, %v268_v57  ;;  %v679_v62 = vpack.c.bf16 %v275_v60, %v273_v59  ;;  %v274_v0 = vld [vmem:[%s1039_s2 + $0x1f0] sm:$0xff] }
  0x58   : > { %646 = vmatpush1.bf16.msra.mxu1 %v645_v63  ;;  %612 = vmatmul.mubr.msk.f32.vlgmr.msra.gmra.mrb[0].mxu0 %vm308_vm0, %v305_v23  ;;  %v272_v63 = vld [vmem:[%s1039_s2 + $0x1e0] sm:$0xff]  ;;  %v898_v23 = vmov 1966171168  }
  0x59   : > { %648 = vmatprep.subr.bf16.mxu1 %v647_v4  ;;  %v681_v2 = vpack.c.bf16 %v274_v0, %v272_v63 }
  0x5c   : > { %650 = vmatpush1.bf16.msra.mxu1 %v649_v14 }
  0x5d   : > { %652 = vmatprep.subr.bf16.mxu1 %v651_v16 }
  0x60   : > { %654 = vmatpush1.bf16.msra.mxu1 %v653_v22 }
  0x61   : > { %656 = vmatprep.subr.bf16.mxu1 %v655_v24  ;;  %v485_v24 = vunpack.c.l.s4 %v898_v23 }
  0x64   : > { %658 = vmatpush1.bf16.msra.mxu1 %v657_v29 }
  0x65   : > { %660 = vmatprep.subr.bf16.mxu1 %v659_v30  ;;  %v486_v30 = vunpack.c.0.s8 %v485_v24 }
  0x67   : > { %v489_v40 = vsub.s32 %v486_v30, %v1076_v45 }
  0x68   : > { %662 = vmatpush1.bf16.msra.mxu1 %v661_v36 }
  0x69   : > { %664 = vmatprep.subr.bf16.mxu1 %v663_v37 }
  0x6c   : > { %666 = vmatpush1.bf16.msra.mxu1 %v665_v42 }
  0x6d   : > { %668 = vmatprep.subr.bf16.mxu1 %v667_v43 }
  0x70   : > { %670 = vmatpush1.bf16.msra.mxu1 %v669_v49 }
  0x71   : > { %672 = vmatprep.subr.bf16.mxu1 %v671_v50 }
  0x74   : > { %674 = vmatpush1.bf16.msra.mxu1 %v673_v55 }
  0x75   : > { %676 = vmatprep.subr.bf16.mxu1 %v675_v56 }
  0x78   : > { %678 = vmatpush1.bf16.msra.mxu1 %v677_v61 }
  0x79   : > { %680 = vmatprep.subr.bf16.mxu1 %v679_v62 }
  0x7c   : > { %682 = vmatpush1.bf16.msra.mxu1 %v681_v2 }
  0x7f   : > { %376 = vmatmul.mubr.f32.vlgmr.msra.gmra.mrb[0].mxu1 %v297_v3 }
 0x12b   : > { %v448_v4 = vpop.f32.mrb[0].mxu0 }
 0x12c   : > { %v450_v5 = vpop.f32.mrb[1].mxu0 }
 0x152   : > { %v377_v7 = vpop.f32.mrb[0].mxu1 }
 0x153   : > { %v378_v8 = vadd.f32 %v377_v7, %v292_v6  ;;  %v379_v9 = vpop.f32.mrb[1].mxu1 }
 0x154   : > { %v380_v10 = vadd.f32 %v379_v9, %v292_v6 }
 0x155   : > { %v449_v11 = vadd.f32 %v448_v4, %v378_v8 }
 0x156   : > { %v451_v13 = vadd.f32 %v450_v5, %v380_v10 }
 0x157   : > { %v453_v14 = vmin.f32 %v449_v11, 20.0  ;;  %vm477_vm2 = vcmp.gt.f32.partialorder %v449_v11, 20.0 }
 0x158   : > { %v454_v15 = vmin.f32 %v451_v13, 20.0  ;;  %vm478_vm4 = vcmp.gt.f32.partialorder %v451_v13, 20.0 }
 0x159   : > { %v455_v16 = vmul.f32 1.442695, %v453_v14 }
 0x15a   : > { %v457_v17 = vmul.f32 1.442695, %v454_v15 }
 0x15b   : > { %772 = vpow2.f32 %v455_v16 }
 0x15c   : > { %774 = vpow2.f32 %v457_v17 }
 0x165   : > { %v773_v18 = vpop.eup %772 }
 0x166   : > { %v775_v12 = vpop.eup %774  ;;  %v459_v19 = vadd.f32 1.0, %v773_v18  ;;  %v462_v21 = vmul.f32 -0.5, %v773_v18  ;;  %v465_v26 = vand.u32 2147483647, %v773_v18 }
 0x167   : > { %v468_v20 = vadd.f32 1.0, %v775_v12  ;;  %v471_v22 = vmul.f32 -0.5, %v775_v12  ;;  %v474_v28 = vand.u32 2147483647, %v775_v12 }
 0x168   : > { %776 = vlog2.f32 %v459_v19  ;;  %v463_v25 = vadd.f32 1.0, %v462_v21  ;;  %vm466_vm1 = vcmp.lt.f32.partialorder %v465_v26, 0.0004427343 }
 0x169   : > { %778 = vlog2.f32 %v468_v20  ;;  %v472_v27 = vadd.f32 1.0, %v471_v22  ;;  %vm475_vm3 = vcmp.lt.f32.partialorder %v474_v28, 0.0004427343 }
 0x16a   : > { %v464_v34 = vmul.f32 %v773_v18, %v463_v25 }
 0x16b   : > { %v473_v36 = vmul.f32 %v775_v12, %v472_v27 }
 0x172   : > { %v777_v29 = vpop.eup %776 }
 0x173   : > { %v779_v31 = vpop.eup %778  ;;  %v461_v33 = vmul.f32 0.6931472, %v777_v29 }
 0x174   : > { %v470_v35 = vmul.f32 0.6931472, %v779_v31 }
 0x175   : > { %v467_v37 = vsel %vm466_vm1, %v464_v34, %v461_v33 }
 0x176   : > { %v479_v38 = vsel %vm477_vm2, %v449_v11, %v467_v37  ;;  %v476_v39 = vsel %vm475_vm3, %v473_v36, %v470_v35 }
 0x177   : > { %v480_v41 = vsel %vm478_vm4, %v451_v13, %v476_v39 }
 0x178   : > { %v483_v42 = vcombine.low %v479_v38, %v480_v41 }
 0x17a   : > { %v490_v43 = vrot.slane %v483_v42, %v489_v40 }
 0x17c   : > { %v497_v44 = vrot.slane %v490_v43, %v489_v40 }
 0x17e   : > { %503 = vst.msk [vmem:[%s207_s20] sm:$0x3] %vm501_vm5, %v497_v44 }
 0x17f   : > { %823 = shalt.err (!%p820_p4)
}
 0x180   : > { %s824_s9 = scalar_lea.hbm %s1146_s29, 32  ;;  %s828_s2 = scalar_lea.hbm %s1198_s3, 64 }
 0x181   : > { %p825_p6 = scmp.ne.s32.totalorder %s1146_s29, %s824_s9  ;;  %p829_p12 = scmp.lt.u32.totalorder %s1146_s29, %s1198_s3 }
 0x182   : > { %p830_p1 = scmp.lt.u32.totalorder %s828_s2, %s824_s9  ;;  %p832_p8 = scmp.lt.u32.totalorder %s824_s9, %s1146_s29 }
 0x183   : > { %p826_p7 = pnand %p825_p6, %p1206_p9 }
 0x184   : > { %p831_p3 = por %p830_p1, %p829_p12 }
 0x185   : > { %p827_p10 = pneg %p826_p7 }
 0x186   : > { %p833_p11 = por %p832_p8, %p831_p3 }
 0x188   : > { %p834_p0 = pnand %p833_p11, %p827_p10 }
 0x18a   : > { %837 = shalt.err (!%p834_p0)
}
 0x18b   : > { %708 = dma.vmem_to_hbm [thread:$0]  (%p1206_p9), %s1148_s22, 32, %s1146_s29, %s505_s30  }
 0x18c PF: > { %s533_s8 = sand.u32 1, %s872_s14   ;;  %p1207_p5 = scmp.ne.s32.totalorder %s1203_s28, 0 }
 0x18d   : > { %p1208_p13 = scmp.ge.s32.totalorder %s892_s19, 2  ;;  %s534_s10 = scalar_lea.sflag [#allocation5], %s533_s8 }
 0x18f   : > { %p715_p2 = pnand %p1208_p13, %p1207_p5 }
 0x191   : > { %867 = dma.done.wait (!%p715_p2), %s534_s10, 32  }
 0x192   : > { %869 = vsyncadd (!%p715_p2), %s534_s10, 4294967264  ;;  %s20_s19 = sadd.s32 1, %s892_s19   ;;  %s1209_s14 = smov %s876_s15 }
 0x193   : > { %p17_p4 = scmp.ge.s32.totalorder %s20_s19, 4   ;;  %s1210_s15 = smov %s880_s16 }
 0x194   : > { %s1211_s16 = smov %s979_s27  ;;  %s1212_s17 = smov %s888_s18 }
 0x195   : > { %s1213_s18 = smov %s1215_s21  ;;  %19 = sbr.rel (!%p17_p4) target bundleno = 8 (0x8), region = 77 }
 0x19c   :  { %539 = vsyncpa [#allocation4], 1 }
 0x19d   :  { %541 = vsyncpa [#allocation4 + $0x1], 1 }
 0x19e   :  { %542 = vsyncpa [#allocation5], 1 }
 0x19f   :  { %544 = vsyncpa [#allocation5 + $0x1], 1 }

</bundles_post_ra>
